<compile_context>
chip_gen: v5e
topology: v5e:2x2
jax: 0.10.0
libtpu: 0.0.40
codegen_flags: <defaults>
</compile_context>

<pallas_src>
import functools
import math

import jax
import jax.numpy as jnp
import numpy as np
from jax import lax
from jax.experimental import pallas as pl
from jax.experimental.pallas import tpu as pltpu


def _tile_lanes(v, reps):
    """Tile a (tb, C) array along the lane axis to (tb, C*reps)."""
    if reps == 1:
        return v
    if (reps & (reps - 1)) == 0:                      # power of two: log2 doubling
        out = v
        r = reps
        while r > 1:
            out = jnp.concatenate([out, out], axis=-1)
            r //= 2
        return out
    return jnp.concatenate([v] * reps, axis=-1)


def _mrla_kernel(x_ref, wq_ref, wk_ref, wv_ref, out_ref, *,
                 heads, dim_perhead, k_size, pad, norm_fact, W, C):
    """One grid step: a (tb, H, W*C) lane-dense batch tile, end-to-end in VMEM."""
    f32 = jnp.float32
    tb, H, WC = x_ref.shape                           # WC == W * C

    x_f = x_ref[...].astype(f32)                      # single full-tile cast

    # ---- 1. global average pool -> y (tb, C) -------------------------------
    xs = jnp.sum(x_f, axis=1)                         # (tb, WC) sublane reduce
    if (W & (W - 1)) == 0:
        # roll-tree over the W repeats (W is a power of two for CIFAR stages):
        # after log2(W) roll+adds every lane holds its channel's full sum.
        s = xs
        step = C
        while step < WC:
            s = s + pltpu.roll(s, shift=WC - step, axis=1)   # s[j] += s[j+step]
            step *= 2
        y = s[:, 0:C]
    else:
        y = xs[:, 0:C]
        for wpos in range(1, W):
            y = y + xs[:, wpos * C:(wpos + 1) * C]
    y = y * (1.0 / (H * W))                           # (tb, C)

    # ---- 2. Wq / Wk: k-tap 1-D conv along the channel (lane) axis ----------
    lane_c = lax.broadcasted_iota(jnp.int32, (1, C), 1)
    q = jnp.zeros_like(y)
    k = jnp.zeros_like(y)
    for t in range(k_size):
        off = t - pad                                 # -pad .. +pad
        if off == 0:
            ys = y
        else:
            ys = pltpu.roll(y, shift=(-off) % C, axis=1)      # ys[:,j] = y[:,j+off]
            ys = jnp.where((lane_c + off >= 0) & (lane_c + off < C), ys, 0.0)
        q = q + wq_ref[t] * ys
        k = k + wk_ref[t] * ys

    # ---- 3. per-head attention: sigmoid(<Q_h, K_h> / sqrt(d)) --------------
    qk = q * k                                        # (tb, C)
    if (dim_perhead & (dim_perhead - 1)) == 0:
        # XOR-butterfly segmented reduce (heads are contiguous, dph-aligned):
        # after log2(dph) steps every lane holds its head's sum (rides the XLU).
        s = qk
        shift = 1
        while shift < dim_perhead:
            fwd = pltpu.roll(s, shift=(C - shift) % C, axis=1)   # s[:, j+shift]
            bwd = pltpu.roll(s, shift=shift % C, axis=1)         # s[:, j-shift]
            s = s + jnp.where((lane_c & shift) == 0, fwd, bwd)
            shift *= 2
        attn_c = jax.nn.sigmoid(s * norm_fact)        # (tb, C), head sum replicated
    else:
        head_id = lane_c // dim_perhead
        attn_c = jnp.zeros_like(qk)
        for hh in range(heads):
            in_head = head_id == hh
            hs = jnp.sum(jnp.where(in_head, qk, 0.0), axis=1, keepdims=True)
            a = jax.nn.sigmoid(hs * norm_fact)
            attn_c = attn_c + jnp.where(in_head, a, 0.0)

    # ---- 4. taps: fold attention + dx edge masks into the 9 depthwise taps --
    attn_t = _tile_lanes(attn_c, W)                   # (tb, WC) f32
    wv_all = wv_ref[...].astype(f32)                  # (9, WC), W-tiled by wrapper
    lane = lax.broadcasted_iota(jnp.int32, (1, WC), 1)
    left_ok = lane >= C                               # dx == 0 reads column w-1
    right_ok = lane < WC - C                          # dx == 2 reads column w+1
    taps = []
    for idx in range(9):
        t9 = attn_t * wv_all[idx:idx + 1, :]          # (tb, WC)
        dx = idx % 3
        if dx == 0:
            t9 = jnp.where(left_ok, t9, 0.0)
        elif dx == 2:
            t9 = jnp.where(right_ok, t9, 0.0)
        taps.append(t9[:, None, :])                   # (tb, 1, WC)

    # ---- 5. depthwise 3x3 with attention folded in ---------------------------
    # Horizontal shifts: lane roll by C (edge masks already in the taps).
    left_f = pltpu.roll(x_f, shift=C % WC, axis=2)            # column w-1
    right_f = pltpu.roll(x_f, shift=(WC - C) % WC, axis=2)    # column w+1
    cols = (left_f, x_f, right_f)

    # Horizontal partial per dy row-offset (f32).
    R = []
    for dy in range(3):
        r = cols[0] * taps[dy * 3 + 0]
        r = r + cols[1] * taps[dy * 3 + 1]
        r = r + cols[2] * taps[dy * 3 + 2]
        R.append(r)

    # Vertical combine: out[h] = R0[h-1] + R1[h] + R2[h+1] (zero at the borders).
    row = lax.broadcasted_iota(jnp.int32, (1, H, 1), 1)
    up = jnp.where(row > 0, pltpu.roll(R[0], shift=1 % H, axis=1), 0.0)
    dn = jnp.where(row < H - 1, pltpu.roll(R[2], shift=(H - 1) % H, axis=1), 0.0)
    out_ref[...] = (R[1] + up + dn).astype(out_ref.dtype)


def mrla_light_forward_nhwc(x_nhwc, wq, wk, wv, heads=None, dim_perhead=None,
                            *, block_b=None, vmem_budget_bytes=None):
    """mrla_light_layer.forward on NHWC activations (preferred TPU layout).

    Accepts f32 or bf16 activations (math in f32, output keeps the input
    dtype).  wq/wk are the PyTorch Conv1d weights (1, 1, k), wv the depthwise
    Conv2d weight (c, 1, 3, 3).
    """
    x_nhwc = jnp.asarray(x_nhwc)
    b, h, w, c = x_nhwc.shape
    if heads is None:
        if dim_perhead is None:
            raise ValueError("heads and dim_perhead cannot both be None")
        heads = c // dim_perhead
    dph = c // heads
    assert heads * dph == c, "channels must be divisible by heads"
    norm_fact = 1.0 / math.sqrt(c / heads)
    k_size = int(np.shape(wq)[-1])
    assert k_size % 2 == 1, "k_size must be odd to match PyTorch 'same' Conv1d padding"
    pad = (k_size - 1) // 2

    wq1 = jnp.asarray(wq, jnp.float32).reshape(k_size)
    wk1 = jnp.asarray(wk, jnp.float32).reshape(k_size)
    # depthwise (c, 1, 3, 3) -> (9, c); tap index = dy*3 + dx; tiled to (9, w*c)
    wv9 = jnp.transpose(jnp.asarray(wv, jnp.float32).reshape(c, 9), (1, 0))
    wv_tiled = jnp.tile(wv9, (1, w))                  # (9, w*c)

    wc = w * c
    itemsize = jnp.dtype(x_nhwc.dtype).itemsize

    # --- honest VMEM accounting: in/out blocks double-buffered (input dtype),
    #     x_f/left/right/R f32 temporaries, per-tap (tb, WC) f32 taps. ---------
    per_img = h * wc * (4 * itemsize + 28) + 9 * wc * 4
    fixed = 2 * 9 * wc * 4 + (1 << 16)                # wv block (2 bufs) + slack

    vmem_phys = 64 << 20                              # conservative (v7x) default
    try:
        info = pltpu.get_tpu_info()
        cap_bytes = getattr(info, "vmem_capacity_bytes", None)
        if cap_bytes:
            vmem_phys = int(cap_bytes)
    except Exception:
        pass
    if vmem_budget_bytes is None:
        # ~35 MiB on v7x (64 MiB physical), ~70 MiB on v5e/v6e (128 MiB).
        vmem_budget_bytes = min(int(vmem_phys * 0.55), 96 << 20)
    vmem_limit = max(32 << 20,
                     min(int(vmem_phys * 0.9), vmem_budget_bytes + (16 << 20)))

    # --- batch tile: biggest VMEM-fitting tile, capped so the "parallel" batch
    #     axis keeps >=2 (ideally >=4) grid steps for v7x's two TensorCores. ---
    min_steps = 4 if b >= 4 else (2 if b >= 2 else 1)
    cap = max(1, -(-b // min_steps))
    if block_b is None:
        block_b = 1
        for tb in range(min(cap, b), 0, -1):
            if fixed + tb * per_img <= vmem_budget_bytes:
                block_b = tb
                break
    grid_b = -(-b // block_b)                         # cdiv: tail block is masked

    x_flat = x_nhwc.reshape(b, h, wc)                 # lane-dense view (free)

    kernel = functools.partial(_mrla_kernel, heads=heads, dim_perhead=dph,
                               k_size=k_size, pad=pad, norm_fact=norm_fact,
                               W=w, C=c)

    out_flat = pl.pallas_call(
        kernel,
        out_shape=jax.ShapeDtypeStruct((b, h, wc), x_nhwc.dtype),
        grid_spec=pltpu.PrefetchScalarGridSpec(
            num_scalar_prefetch=0,
            grid=(grid_b,),
            in_specs=[
                pl.BlockSpec((block_b, h, wc), lambda i: (i, 0, 0)),
                pl.BlockSpec(memory_space=pltpu.MemorySpace.SMEM),   # wq taps
                pl.BlockSpec(memory_space=pltpu.MemorySpace.SMEM),   # wk taps
                pl.BlockSpec((9, wc), lambda i: (0, 0)),             # wv (W-tiled)
            ],
            out_specs=pl.BlockSpec((block_b, h, wc), lambda i: (i, 0, 0)),
        ),
        compiler_params=pltpu.CompilerParams(
            dimension_semantics=("parallel",),
            vmem_limit_bytes=vmem_limit,
        ),
        cost_estimate=pl.CostEstimate(
            flops=17 * b * h * w * c,
            transcendentals=b * heads,
            bytes_accessed=2 * b * h * w * c * itemsize + 9 * w * c * 4,
        ),
    )(x_flat, wq1, wk1, wv_tiled)

    return out_flat.reshape(b, h, w, c)


def mrla_light_forward(x_nchw, wq, wk, wv, heads=None, dim_perhead=None):
    """NCHW compatibility wrapper (matches the PyTorch module's layout).

    Prefer mrla_light_forward_nhwc inside an NHWC pipeline: the two layout
    transposes here cost a full extra HBM round trip each.
    """
    x_nhwc = jnp.transpose(x_nchw, (0, 2, 3, 1))
    out = mrla_light_forward_nhwc(x_nhwc, wq, wk, wv,
                                  heads=heads, dim_perhead=dim_perhead)
    return jnp.transpose(out, (0, 3, 1, 2))


def _reference(x, wq, wk, wv, heads):
    """Pure-JAX replica of the PyTorch forward (NCHW) for verification."""
    b, c, h, w = x.shape
    dim_perhead = c // heads
    norm_fact = 1.0 / math.sqrt(c / heads)
    k_size = wq.shape[-1]
    pad = (k_size - 1) // 2

    y = x.mean(axis=(2, 3))                           # (b, c)
    ypad = jnp.pad(y, ((0, 0), (pad, pad)))

    def conv1d(yp, wvec):
        return sum(wvec[t] * yp[:, t:t + c] for t in range(k_size))

    Q = conv1d(ypad, wq.reshape(-1))                  # (b, c)
    K = conv1d(ypad, wk.reshape(-1))                  # (b, c)
    V = lax.conv_general_dilated(
        x, wv, window_strides=(1, 1), padding=((1, 1), (1, 1)),
        dimension_numbers=('NCHW', 'OIHW', 'NCHW'), feature_group_count=c)

    Qh = Q.reshape(b, heads, dim_perhead)
    Kh = K.reshape(b, heads, dim_perhead)
    attn = jax.nn.sigmoid(jnp.sum(Qh * Kh, axis=-1) * norm_fact)   # (b, heads)
    attn_c = jnp.repeat(attn, dim_perhead, axis=1)                 # (b, c)
    return V * attn_c[:, :, None, None]


def _run_case(key, b, c, h, w, dim_perhead, dtype=jnp.float32):
    heads = c // dim_perhead
    t = int(abs((math.log(c, 2) + 1) / 2.0))
    k_size = t if t % 2 else t + 1

    kx, kq, kk_, kv = jax.random.split(key, 4)
    x_f32 = jax.random.normal(kx, (b, c, h, w), dtype=jnp.float32)
    wq = jax.random.normal(kq, (1, 1, k_size), dtype=jnp.float32) * 0.5
    wk = jax.random.normal(kk_, (1, 1, k_size), dtype=jnp.float32) * 0.5
    wv = jax.random.normal(kv, (c, 1, 3, 3), dtype=jnp.float32) * 0.3

    x_nchw = x_f32.astype(dtype)
    # Reference uses the (possibly bf16-quantised) input values in f32 math.
    ref_nchw = _reference(x_nchw.astype(jnp.float32), wq, wk, wv, heads)

    rtol = atol = 1e-4 if dtype == jnp.float32 else 3e-2

    # Fast path: NHWC end-to-end (no layout round trips around the kernel).
    x_nhwc = jnp.transpose(x_nchw, (0, 2, 3, 1))
    out_nhwc = jax.block_until_ready(
        mrla_light_forward_nhwc(x_nhwc, wq, wk, wv, heads=heads))
    assert out_nhwc.dtype == dtype
    np.testing.assert_allclose(
        np.asarray(out_nhwc, dtype=np.float32),
        np.asarray(jnp.transpose(ref_nchw, (0, 2, 3, 1))),
        rtol=rtol, atol=atol)

    # NCHW compatibility wrapper (PyTorch layout); f32 cases only (keeps it short).
    if dtype == jnp.float32:
        out_nchw = jax.block_until_ready(
            mrla_light_forward(x_nchw, wq, wk, wv, heads=heads))
        np.testing.assert_allclose(np.asarray(out_nchw), np.asarray(ref_nchw),
                                   rtol=rtol, atol=atol)


if __name__ == "__main__":
    key = jax.random.PRNGKey(0)
    k1, k2, k3, k4 = jax.random.split(key, 4)
    # Toy shape: c=16, dim_perhead=4 -> heads=4, k_size=3 (lane width W*C = 128).
    _run_case(k1, b=2, c=16, h=8, w=8, dim_perhead=4)
    # CIFAR ResNet stage-3 shape (mrla_module uses dim_perhead=32): c=64, heads=2.
    # b=3 exercises the cdiv tail block (block_b=2, grid=2 with a padded tail).
    _run_case(k2, b=3, c=64, h=8, w=8, dim_perhead=32)
    # Non-power-of-two dim_perhead exercises the masked head-loop fallback.
    _run_case(k3, b=4, c=24, h=8, w=8, dim_perhead=6)
    # bf16 activations (HBM I/O in bf16, f32 accumulation inside the kernel).
    _run_case(k4, b=4, c=64, h=8, w=8, dim_perhead=32, dtype=jnp.bfloat16)
    print("KERNEL_OK")
</pallas_src>

<mosaic_0001>
module attributes {stable_mosaic.version = 11 : i64} {
  func.func @_mrla_kernel(%arg0: i32, %arg1: memref<1x8x128xf32, #tpu.memory_space<vmem>>, %arg2: memref<3xf32, #tpu.memory_space<smem>>, %arg3: memref<3xf32, #tpu.memory_space<smem>>, %arg4: memref<9x128xf32, #tpu.memory_space<vmem>>, %arg5: memref<1x8x128xf32, #tpu.memory_space<vmem>>) attributes {dimension_semantics = [#tpu.dimension_semantics<parallel>], iteration_bounds = array<i64: 2>, scalar_prefetch = 0 : i64, scratch_operands = 0 : i64, tpu.core_type = #tpu.core_type<tc>, window_params = [{transform_indices = @transform_0, window_bounds = array<i64: 1, 8, 128>}, {transform_indices = @transform_1, window_bounds = array<i64: 3>}, {transform_indices = @transform_2, window_bounds = array<i64: 3>}, {pipeline_mode = #tpu.pipeline_mode<synchronous>, transform_indices = @transform_3, window_bounds = array<i64: 9, 128>}, {transform_indices = @transform_4, window_bounds = array<i64: 1, 8, 128>}]} {
    %c0 = arith.constant 0 : index
    %c0_0 = arith.constant 0 : index
    %c0_1 = arith.constant 0 : index
    %0 = vector.load %arg1[%c0, %c0_0, %c0_1] : memref<1x8x128xf32, #tpu.memory_space<vmem>>, vector<1x8x128xf32>
    %cst = arith.constant dense<0.000000e+00> : vector<1x128xf32>
    %1 = vector.multi_reduction <add>, %0, %cst [1] : vector<1x8x128xf32> to vector<1x128xf32>
    %c112_i32 = arith.constant 112 : i32
    %2 = tpu.dynamic_rotate %1 by %c112_i32 dim 1 : vector<1x128xf32>, i32 -> vector<1x128xf32>
    %3 = arith.addf %1, %2 : vector<1x128xf32>
    %c96_i32 = arith.constant 96 : i32
    %4 = tpu.dynamic_rotate %3 by %c96_i32 dim 1 : vector<1x128xf32>, i32 -> vector<1x128xf32>
    %5 = arith.addf %3, %4 : vector<1x128xf32>
    %c64_i32 = arith.constant 64 : i32
    %6 = tpu.dynamic_rotate %5 by %c64_i32 dim 1 : vector<1x128xf32>, i32 -> vector<1x128xf32>
    %7 = arith.addf %5, %6 : vector<1x128xf32>
    %8 = vector.extract_strided_slice %7 {offsets = [0, 0], sizes = [1, 16], strides = [1, 1]} : vector<1x128xf32> to vector<1x16xf32>
    %cst_2 = arith.constant 1.562500e-02 : f32
    %9 = vector.broadcast %cst_2 : f32 to vector<1x16xf32>
    %10 = arith.mulf %8, %9 : vector<1x16xf32>
    %11 = tpu.iota {dimensions = array<i32: 1>} : vector<1x16xi32>
    %cst_3 = arith.constant 0.000000e+00 : f32
    %12 = vector.broadcast %cst_3 : f32 to vector<1x16xf32>
    %cst_4 = arith.constant 0.000000e+00 : f32
    %13 = vector.broadcast %cst_4 : f32 to vector<1x16xf32>
    %c1_i32 = arith.constant 1 : i32
    %14 = tpu.dynamic_rotate %10 by %c1_i32 dim 1 : vector<1x16xf32>, i32 -> vector<1x16xf32>
    %c-1_i32 = arith.constant -1 : i32
    %15 = vector.broadcast %c-1_i32 : i32 to vector<1x16xi32>
    %16 = arith.addi %11, %15 : vector<1x16xi32>
    %c0_i32 = arith.constant 0 : i32
    %17 = vector.broadcast %c0_i32 : i32 to vector<1x16xi32>
    %18 = arith.cmpi sge, %16, %17 : vector<1x16xi32>
    %c-1_i32_5 = arith.constant -1 : i32
    %19 = vector.broadcast %c-1_i32_5 : i32 to vector<1x16xi32>
    %20 = arith.addi %11, %19 : vector<1x16xi32>
    %c16_i32 = arith.constant 16 : i32
    %21 = vector.broadcast %c16_i32 : i32 to vector<1x16xi32>
    %22 = arith.cmpi slt, %20, %21 : vector<1x16xi32>
    %23 = arith.andi %18, %22 : vector<1x16xi1>
    %cst_6 = arith.constant 0.000000e+00 : f32
    %24 = vector.broadcast %cst_6 : f32 to vector<1x16xf32>
    %25 = arith.select %23, %14, %24 : vector<1x16xi1>, vector<1x16xf32>
    %c0_7 = arith.constant 0 : index
    %26 = memref.load %arg2[%c0_7] : memref<3xf32, #tpu.memory_space<smem>>
    %27 = vector.broadcast %26 : f32 to vector<1x16xf32>
    %28 = arith.mulf %27, %25 : vector<1x16xf32>
    %29 = arith.addf %12, %28 : vector<1x16xf32>
    %c0_8 = arith.constant 0 : index
    %30 = memref.load %arg3[%c0_8] : memref<3xf32, #tpu.memory_space<smem>>
    %31 = vector.broadcast %30 : f32 to vector<1x16xf32>
    %32 = arith.mulf %31, %25 : vector<1x16xf32>
    %33 = arith.addf %13, %32 : vector<1x16xf32>
    %c1 = arith.constant 1 : index
    %34 = memref.load %arg2[%c1] : memref<3xf32, #tpu.memory_space<smem>>
    %35 = vector.broadcast %34 : f32 to vector<1x16xf32>
    %36 = arith.mulf %35, %10 : vector<1x16xf32>
    %37 = arith.addf %29, %36 : vector<1x16xf32>
    %c1_9 = arith.constant 1 : index
    %38 = memref.load %arg3[%c1_9] : memref<3xf32, #tpu.memory_space<smem>>
    %39 = vector.broadcast %38 : f32 to vector<1x16xf32>
    %40 = arith.mulf %39, %10 : vector<1x16xf32>
    %41 = arith.addf %33, %40 : vector<1x16xf32>
    %c15_i32 = arith.constant 15 : i32
    %42 = tpu.dynamic_rotate %10 by %c15_i32 dim 1 : vector<1x16xf32>, i32 -> vector<1x16xf32>
    %c1_i32_10 = arith.constant 1 : i32
    %43 = vector.broadcast %c1_i32_10 : i32 to vector<1x16xi32>
    %44 = arith.addi %11, %43 : vector<1x16xi32>
    %c0_i32_11 = arith.constant 0 : i32
    %45 = vector.broadcast %c0_i32_11 : i32 to vector<1x16xi32>
    %46 = arith.cmpi sge, %44, %45 : vector<1x16xi32>
    %c1_i32_12 = arith.constant 1 : i32
    %47 = vector.broadcast %c1_i32_12 : i32 to vector<1x16xi32>
    %48 = arith.addi %11, %47 : vector<1x16xi32>
    %c16_i32_13 = arith.constant 16 : i32
    %49 = vector.broadcast %c16_i32_13 : i32 to vector<1x16xi32>
    %50 = arith.cmpi slt, %48, %49 : vector<1x16xi32>
    %51 = arith.andi %46, %50 : vector<1x16xi1>
    %cst_14 = arith.constant 0.000000e+00 : f32
    %52 = vector.broadcast %cst_14 : f32 to vector<1x16xf32>
    %53 = arith.select %51, %42, %52 : vector<1x16xi1>, vector<1x16xf32>
    %c2 = arith.constant 2 : index
    %54 = memref.load %arg2[%c2] : memref<3xf32, #tpu.memory_space<smem>>
    %55 = vector.broadcast %54 : f32 to vector<1x16xf32>
    %56 = arith.mulf %55, %53 : vector<1x16xf32>
    %57 = arith.addf %37, %56 : vector<1x16xf32>
    %c2_15 = arith.constant 2 : index
    %58 = memref.load %arg3[%c2_15] : memref<3xf32, #tpu.memory_space<smem>>
    %59 = vector.broadcast %58 : f32 to vector<1x16xf32>
    %60 = arith.mulf %59, %53 : vector<1x16xf32>
    %61 = arith.addf %41, %60 : vector<1x16xf32>
    %62 = arith.mulf %57, %61 : vector<1x16xf32>
    %c15_i32_16 = arith.constant 15 : i32
    %63 = tpu.dynamic_rotate %62 by %c15_i32_16 dim 1 : vector<1x16xf32>, i32 -> vector<1x16xf32>
    %c1_i32_17 = arith.constant 1 : i32
    %64 = tpu.dynamic_rotate %62 by %c1_i32_17 dim 1 : vector<1x16xf32>, i32 -> vector<1x16xf32>
    %c1_i32_18 = arith.constant 1 : i32
    %65 = vector.broadcast %c1_i32_18 : i32 to vector<1x16xi32>
    %66 = arith.andi %11, %65 : vector<1x16xi32>
    %c0_i32_19 = arith.constant 0 : i32
    %67 = vector.broadcast %c0_i32_19 : i32 to vector<1x16xi32>
    %68 = arith.cmpi eq, %66, %67 : vector<1x16xi32>
    %69 = arith.select %68, %63, %64 : vector<1x16xi1>, vector<1x16xf32>
    %70 = arith.addf %62, %69 : vector<1x16xf32>
    %c14_i32 = arith.constant 14 : i32
    %71 = tpu.dynamic_rotate %70 by %c14_i32 dim 1 : vector<1x16xf32>, i32 -> vector<1x16xf32>
    %c2_i32 = arith.constant 2 : i32
    %72 = tpu.dynamic_rotate %70 by %c2_i32 dim 1 : vector<1x16xf32>, i32 -> vector<1x16xf32>
    %c2_i32_20 = arith.constant 2 : i32
    %73 = vector.broadcast %c2_i32_20 : i32 to vector<1x16xi32>
    %74 = arith.andi %11, %73 : vector<1x16xi32>
    %c0_i32_21 = arith.constant 0 : i32
    %75 = vector.broadcast %c0_i32_21 : i32 to vector<1x16xi32>
    %76 = arith.cmpi eq, %74, %75 : vector<1x16xi32>
    %77 = arith.select %76, %71, %72 : vector<1x16xi1>, vector<1x16xf32>
    %78 = arith.addf %70, %77 : vector<1x16xf32>
    %cst_22 = arith.constant 5.000000e-01 : f32
    %79 = vector.broadcast %cst_22 : f32 to vector<1x16xf32>
    %80 = arith.mulf %78, %79 : vector<1x16xf32>
    %81 = arith.negf %80 : vector<1x16xf32>
    %82 = math.exp %81 : vector<1x16xf32>
    %cst_23 = arith.constant 1.000000e+00 : f32
    %83 = vector.broadcast %cst_23 : f32 to vector<1x16xf32>
    %84 = arith.addf %83, %82 : vector<1x16xf32>
    %85 = arith.divf %83, %84 : vector<1x16xf32>
    %86 = tpu.concatenate %85, %85 in 1 : vector<1x16xf32>, vector<1x16xf32> -> vector<1x32xf32>
    %87 = tpu.concatenate %86, %86 in 1 : vector<1x32xf32>, vector<1x32xf32> -> vector<1x64xf32>
    %88 = tpu.concatenate %87, %87 in 1 : vector<1x64xf32>, vector<1x64xf32> -> vector<1x128xf32>
    %c0_24 = arith.constant 0 : index
    %c0_25 = arith.constant 0 : index
    %89 = vector.load %arg4[%c0_24, %c0_25] : memref<9x128xf32, #tpu.memory_space<vmem>>, vector<9x128xf32>
    %90 = tpu.iota {dimensions = array<i32: 1>} : vector<1x128xi32>
    %c16_i32_26 = arith.constant 16 : i32
    %91 = vector.broadcast %c16_i32_26 : i32 to vector<1x128xi32>
    %92 = arith.cmpi sge, %90, %91 : vector<1x128xi32>
    %c112_i32_27 = arith.constant 112 : i32
    %93 = vector.broadcast %c112_i32_27 : i32 to vector<1x128xi32>
    %94 = arith.cmpi slt, %90, %93 : vector<1x128xi32>
    %95 = vector.extract_strided_slice %89 {offsets = [0, 0], sizes = [1, 128], strides = [1, 1]} : vector<9x128xf32> to vector<1x128xf32>
    %96 = arith.mulf %88, %95 : vector<1x128xf32>
    %cst_28 = arith.constant 0.000000e+00 : f32
    %97 = vector.broadcast %cst_28 : f32 to vector<1x128xf32>
    %98 = arith.select %92, %96, %97 : vector<1x128xi1>, vector<1x128xf32>
    %99 = vector.shape_cast %98 : vector<1x128xf32> to vector<1x1x128xf32>
    %100 = vector.extract_strided_slice %89 {offsets = [1, 0], sizes = [1, 128], strides = [1, 1]} : vector<9x128xf32> to vector<1x128xf32>
    %101 = arith.mulf %88, %100 : vector<1x128xf32>
    %102 = vector.shape_cast %101 : vector<1x128xf32> to vector<1x1x128xf32>
    %103 = vector.extract_strided_slice %89 {offsets = [2, 0], sizes = [1, 128], strides = [1, 1]} : vector<9x128xf32> to vector<1x128xf32>
    %104 = arith.mulf %88, %103 : vector<1x128xf32>
    %cst_29 = arith.constant 0.000000e+00 : f32
    %105 = vector.broadcast %cst_29 : f32 to vector<1x128xf32>
    %106 = arith.select %94, %104, %105 : vector<1x128xi1>, vector<1x128xf32>
    %107 = vector.shape_cast %106 : vector<1x128xf32> to vector<1x1x128xf32>
    %108 = vector.extract_strided_slice %89 {offsets = [3, 0], sizes = [1, 128], strides = [1, 1]} : vector<9x128xf32> to vector<1x128xf32>
    %109 = arith.mulf %88, %108 : vector<1x128xf32>
    %cst_30 = arith.constant 0.000000e+00 : f32
    %110 = vector.broadcast %cst_30 : f32 to vector<1x128xf32>
    %111 = arith.select %92, %109, %110 : vector<1x128xi1>, vector<1x128xf32>
    %112 = vector.shape_cast %111 : vector<1x128xf32> to vector<1x1x128xf32>
    %113 = vector.extract_strided_slice %89 {offsets = [4, 0], sizes = [1, 128], strides = [1, 1]} : vector<9x128xf32> to vector<1x128xf32>
    %114 = arith.mulf %88, %113 : vector<1x128xf32>
    %115 = vector.shape_cast %114 : vector<1x128xf32> to vector<1x1x128xf32>
    %116 = vector.extract_strided_slice %89 {offsets = [5, 0], sizes = [1, 128], strides = [1, 1]} : vector<9x128xf32> to vector<1x128xf32>
    %117 = arith.mulf %88, %116 : vector<1x128xf32>
    %cst_31 = arith.constant 0.000000e+00 : f32
    %118 = vector.broadcast %cst_31 : f32 to vector<1x128xf32>
    %119 = arith.select %94, %117, %118 : vector<1x128xi1>, vector<1x128xf32>
    %120 = vector.shape_cast %119 : vector<1x128xf32> to vector<1x1x128xf32>
    %121 = vector.extract_strided_slice %89 {offsets = [6, 0], sizes = [1, 128], strides = [1, 1]} : vector<9x128xf32> to vector<1x128xf32>
    %122 = arith.mulf %88, %121 : vector<1x128xf32>
    %cst_32 = arith.constant 0.000000e+00 : f32
    %123 = vector.broadcast %cst_32 : f32 to vector<1x128xf32>
    %124 = arith.select %92, %122, %123 : vector<1x128xi1>, vector<1x128xf32>
    %125 = vector.shape_cast %124 : vector<1x128xf32> to vector<1x1x128xf32>
    %126 = vector.extract_strided_slice %89 {offsets = [7, 0], sizes = [1, 128], strides = [1, 1]} : vector<9x128xf32> to vector<1x128xf32>
    %127 = arith.mulf %88, %126 : vector<1x128xf32>
    %128 = vector.shape_cast %127 : vector<1x128xf32> to vector<1x1x128xf32>
    %129 = vector.extract_strided_slice %89 {offsets = [8, 0], sizes = [1, 128], strides = [1, 1]} : vector<9x128xf32> to vector<1x128xf32>
    %130 = arith.mulf %88, %129 : vector<1x128xf32>
    %cst_33 = arith.constant 0.000000e+00 : f32
    %131 = vector.broadcast %cst_33 : f32 to vector<1x128xf32>
    %132 = arith.select %94, %130, %131 : vector<1x128xi1>, vector<1x128xf32>
    %133 = vector.shape_cast %132 : vector<1x128xf32> to vector<1x1x128xf32>
    %c16_i32_34 = arith.constant 16 : i32
    %134 = tpu.dynamic_rotate %0 by %c16_i32_34 dim 2 : vector<1x8x128xf32>, i32 -> vector<1x8x128xf32>
    %c112_i32_35 = arith.constant 112 : i32
    %135 = tpu.dynamic_rotate %0 by %c112_i32_35 dim 2 : vector<1x8x128xf32>, i32 -> vector<1x8x128xf32>
    %136 = vector.broadcast %99 : vector<1x1x128xf32> to vector<1x8x128xf32>
    %137 = arith.mulf %134, %136 : vector<1x8x128xf32>
    %138 = vector.broadcast %102 : vector<1x1x128xf32> to vector<1x8x128xf32>
    %139 = arith.mulf %0, %138 : vector<1x8x128xf32>
    %140 = arith.addf %137, %139 : vector<1x8x128xf32>
    %141 = vector.broadcast %107 : vector<1x1x128xf32> to vector<1x8x128xf32>
    %142 = arith.mulf %135, %141 : vector<1x8x128xf32>
    %143 = arith.addf %140, %142 : vector<1x8x128xf32>
    %144 = vector.broadcast %112 : vector<1x1x128xf32> to vector<1x8x128xf32>
    %145 = arith.mulf %134, %144 : vector<1x8x128xf32>
    %146 = vector.broadcast %115 : vector<1x1x128xf32> to vector<1x8x128xf32>
    %147 = arith.mulf %0, %146 : vector<1x8x128xf32>
    %148 = arith.addf %145, %147 : vector<1x8x128xf32>
    %149 = vector.broadcast %120 : vector<1x1x128xf32> to vector<1x8x128xf32>
    %150 = arith.mulf %135, %149 : vector<1x8x128xf32>
    %151 = arith.addf %148, %150 : vector<1x8x128xf32>
    %152 = vector.broadcast %125 : vector<1x1x128xf32> to vector<1x8x128xf32>
    %153 = arith.mulf %134, %152 : vector<1x8x128xf32>
    %154 = vector.broadcast %128 : vector<1x1x128xf32> to vector<1x8x128xf32>
    %155 = arith.mulf %0, %154 : vector<1x8x128xf32>
    %156 = arith.addf %153, %155 : vector<1x8x128xf32>
    %157 = vector.broadcast %133 : vector<1x1x128xf32> to vector<1x8x128xf32>
    %158 = arith.mulf %135, %157 : vector<1x8x128xf32>
    %159 = arith.addf %156, %158 : vector<1x8x128xf32>
    %160 = tpu.iota {dimensions = array<i32: 1>} : vector<1x8x1xi32>
    %c0_i32_36 = arith.constant 0 : i32
    %161 = vector.broadcast %c0_i32_36 : i32 to vector<1x8x1xi32>
    %162 = arith.cmpi sgt, %160, %161 : vector<1x8x1xi32>
    %c1_i32_37 = arith.constant 1 : i32
    %163 = tpu.dynamic_rotate %143 by %c1_i32_37 dim 1 : vector<1x8x128xf32>, i32 -> vector<1x8x128xf32>
    %cst_38 = arith.constant 0.000000e+00 : f32
    %164 = vector.shape_cast %162 : vector<1x8x1xi1> to vector<1x8x1xi1>
    %165 = vector.broadcast %164 : vector<1x8x1xi1> to vector<1x8x128xi1>
    %166 = vector.broadcast %cst_38 : f32 to vector<1x8x128xf32>
    %167 = arith.select %165, %163, %166 : vector<1x8x128xi1>, vector<1x8x128xf32>
    %c7_i32 = arith.constant 7 : i32
    %168 = vector.broadcast %c7_i32 : i32 to vector<1x8x1xi32>
    %169 = arith.cmpi slt, %160, %168 : vector<1x8x1xi32>
    %c7_i32_39 = arith.constant 7 : i32
    %170 = tpu.dynamic_rotate %159 by %c7_i32_39 dim 1 : vector<1x8x128xf32>, i32 -> vector<1x8x128xf32>
    %cst_40 = arith.constant 0.000000e+00 : f32
    %171 = vector.shape_cast %169 : vector<1x8x1xi1> to vector<1x8x1xi1>
    %172 = vector.broadcast %171 : vector<1x8x1xi1> to vector<1x8x128xi1>
    %173 = vector.broadcast %cst_40 : f32 to vector<1x8x128xf32>
    %174 = arith.select %172, %170, %173 : vector<1x8x128xi1>, vector<1x8x128xf32>
    %175 = arith.addf %151, %167 : vector<1x8x128xf32>
    %176 = arith.addf %175, %174 : vector<1x8x128xf32>
    %c0_41 = arith.constant 0 : index
    %c0_42 = arith.constant 0 : index
    %c0_43 = arith.constant 0 : index
    %177 = vector.load %arg5[%c0_41, %c0_42, %c0_43] : memref<1x8x128xf32, #tpu.memory_space<vmem>>, vector<1x8x128xf32>
    tpu.vector_store %arg5[%c0_41, %c0_42, %c0_43], %176 {strides = array<i32>} : memref<1x8x128xf32, #tpu.memory_space<vmem>>, vector<1x8x128xf32>,
    return
  }
  func.func @transform_0(%arg0: i32) -> (i32, i32, i32) {
    %c0_i32 = arith.constant 0 : i32
    %c0_i32_0 = arith.constant 0 : i32
    %c0_i32_1 = arith.constant 0 : i32
    return %arg0, %c0_i32, %c0_i32_0 : i32, i32, i32
  }
  func.func @transform_1(%arg0: i32) -> i32 {
    %c0_i32 = arith.constant 0 : i32
    %c0_i32_0 = arith.constant 0 : i32
    return %c0_i32 : i32
  }
  func.func @transform_2(%arg0: i32) -> i32 {
    %c0_i32 = arith.constant 0 : i32
    %c0_i32_0 = arith.constant 0 : i32
    return %c0_i32 : i32
  }
  func.func @transform_3(%arg0: i32) -> (i32, i32) {
    %c0_i32 = arith.constant 0 : i32
    %c0_i32_0 = arith.constant 0 : i32
    %c0_i32_1 = arith.constant 0 : i32
    return %c0_i32, %c0_i32_0 : i32, i32
  }
  func.func @transform_4(%arg0: i32) -> (i32, i32, i32) {
    %c0_i32 = arith.constant 0 : i32
    %c0_i32_0 = arith.constant 0 : i32
    %c0_i32_1 = arith.constant 0 : i32
    return %arg0, %c0_i32, %c0_i32_0 : i32, i32, i32
  }
}

</mosaic_0001>

<bundles_post_ra>
// kernel: tpu_custom_call.1
= control target key start
LH: loop header
LB: loop body
LE: loop exit
PB: predicated region body
PF: predicated region fallthrough
CT: control target
= control target key end

     0   :  { %9 = vsyncpa [#allocation3], 0  ;;  %s1123_s0 = inlined_call_operand.hbm [shape: f32[2,8,128], index: 0, kind: input, shape index: {}]   ;;  %s1124_s1 = inlined_call_operand.hbm [shape: f32[3], index: 1, kind: input, shape index: {}]   ;;  %s1125_s2 = inlined_call_operand.vmem [shape: f32[3], index: 2, kind: input, shape index: {}]   ;;  %s1126_s3 = inlined_call_operand.hbm [shape: f32[9,128], index: 3, kind: input, shape index: {}]   ;;  %s1127_s4 = inlined_call_operand.hbm [shape: f32[2,8,128], index: 4, kind: output, shape index: {}]  }
   0x1   :  { %11 = vsyncpa [#allocation3 + $0x1], 0 }
   0x2   :  { %12 = vsyncpa [#allocation5], 0 }
   0x3   :  { %13 = vsyncpa [#allocation6], 0 }
   0x4   :  { %14 = vsyncpa [#allocation10], 0 }
   0x5   :  { %15 = vsyncpa [#allocation4], 0 }
   0x6   :  { %17 = vsyncpa [#allocation4 + $0x1], 0  ;;  %s920_s15 = smov 0   ;;  %s922_s16 = smov 0  }
   0x7   :  { %s924_s17 = smov 0   ;;  %s926_s18 = smov 0  }
   0x8 LB: > { %s941_s19 = sadd.s32 4294967295, %s879_s18   ;;  %s596_s20 = sadd.s32 4294967294, %s879_s18   ;;  %s879_s18 = sphi %s926_s18, %s1137_s18   ;;  %s875_s17 = sphi %s924_s17, %s1136_s17   ;;  %s871_s16 = sphi %s922_s16, %s1135_s16   ;;  %s867_s15 = sphi %s920_s15, %s1134_s15  }
   0x9   : > { %p43_p0 = scmp.ne.s32.totalorder %s871_s16, %s867_s15  ;;  %p44_p1 = scmp.eq.s32.totalorder %s941_s19, 0 }
   0xa   : > { %p130_p2 = scmp.eq.s32.totalorder %s941_s19, 1  ;;  %p136_p3 = scmp.eq.s32.totalorder %s596_s20, 1 }
   0xb   : > { %p950_p4 = por %p44_p1, %p43_p0  ;;  %p597_p5 = scmp.ge.s32.totalorder %s879_s18, 1 }
   0xc   : > { %p955_p6 = por %p136_p3, %p43_p0  ;;  %p143_p7 = scmp.lt.s32.totalorder %s879_s18, 3 }
   0xd   : > { %s155_s25 = sshll.u32 %s1124_s1, 4  ;;  %s165_s29 = sshll.u32 %s1125_s2, 4  ;;  %s156_s25 = int_to_ptr.hbm [resolvable:$true] %s155_s25  ;;  %s166_s29 = int_to_ptr.vmem [resolvable:$true] %s165_s29 }
   0xe   : > { %p963_p8 = pnand %p597_p5, %p143_p7  ;;  %s174_s6 = sshll.u32 %s1126_s3, 4  ;;  %s175_s6 = int_to_ptr.hbm [resolvable:$true] %s174_s6 }
   0xf   : > { %s881_s7 = smov [#allocation9]   ;;  %s882_s9 = smov [#allocation7]  }
  0x10   : > { %p635_p10 = pneg %p963_p8  ;;  %s176_s8 = sshll.u32 %s881_s7, 4  ;;  %s177_s8 = int_to_ptr.vmem [resolvable:$true] %s176_s8 }
  0x11   : > { %s883_s10 = smov [#allocation8]   ;;  %s884_s11 = smov 128  }
  0x12   : > { %p636_p11 = pnand %p635_p10, %p44_p1  ;;  %s885_s12 = smov 8  }
  0x13   : > { %s979_s13 = sadd.s32 1, %s879_s18   ;;  %s30_s20 = sadd.s32 1, %s875_s17 }
  0x14   : > { %638 = dma.hbm_to_smem (!%p636_p11), %s156_s25, 16, %s882_s9, [#allocation5]  }
  0x15   : > { %641 = dma.vmem_to_smem (!%p636_p11), %s166_s29, 16, %s883_s10, [#allocation6]  }
  0x16   : > { %644 = dma.hbm_to_vmem [thread:$0]  (!%p636_p11), %s175_s6, 256, %s177_s8, [#allocation10], %s884_s11, %s884_s11, %s885_s12  }
  0x17   : > { %s27_s14 = ssub.s32 %s879_s18, %s979_s13  ;;  %p37_p13 = scmp.ne.s32.totalorder %s875_s17, %s871_s16 }
  0x18   : > { %p28_p12 = scmp.eq.s32.totalorder %s27_s14, 0  ;;  %p38_p0 = scmp.eq.s32.totalorder %s879_s18, 0 }
  0x19   : > { %p992_p3 = por %p130_p2, %p37_p13  ;;  %p656_p5 = scmp.lt.s32.totalorder %s879_s18, 2 }
  0x1a   : > { %s988_s23 = scalar_select %p28_p12, %s875_s17, %s30_s20  }
  0x1b   : > { %s190_s25 = sand.u32 1, %s875_s17   ;;  %s603_s27 = sshll.u32 %s879_s18, 3 }
  0x1c   : > { %p39_p7 = por %p38_p0, %p37_p13  ;;  %s602_s28 = sshll.u32 %s190_s25, 3 }
  0x1d   : > { %s198_s5 = scalar_lea.hbm %s1123_s0, %s603_s27  ;;  %s194_s7 = scalar_lea.vmem [#allocation2], %s602_s28 }
  0x1e   : > { %s200_s6 = sshll.u32 %s198_s5, 4  ;;  %s202_s8 = sshll.u32 %s194_s7, 4  ;;  %s201_s6 = int_to_ptr.hbm [resolvable:$true] %s200_s6  ;;  %s203_s8 = int_to_ptr.vmem [resolvable:$true] %s202_s8 }
  0x1f   : > { %p1002_p10 = pnand %p656_p5, %p39_p7  ;;  %s191_s10 = scalar_lea.sflag [#allocation3], %s190_s25 }
  0x20   : > { %s771_s11 = sshra.s32 %s201_s6, 4  ;;  %s778_s27 = scalar_lea.hbm %s1123_s0, 16  ;;  %s772_s11 = int_to_ptr.hbm [resolvable:$true] %s771_s11 }
  0x21   : > { %s773_s12 = scalar_lea.hbm %s772_s11, 8  ;;  %p775_p11 = pneg %p1002_p10 }
  0x22   : > { %p774_p2 = scmp.ne.s32.totalorder %s772_s11, %s773_s12  ;;  %p779_p0 = scmp.lt.s32.totalorder %s772_s11, %s1123_s0 }
  0x23   : > { %p780_p5 = scmp.lt.s32.totalorder %s778_s27, %s773_s12 }
  0x24   : > { %p776_p12 = pnand %p775_p11, %p774_p2 }
  0x25   : > { %p781_p7 = por %p780_p5, %p779_p0 }
  0x26   : > { %p777_p13 = pneg %p776_p12 }
  0x28   : > { %p782_p9 = pnand %p781_p7, %p777_p13 }
  0x2a   : > { %785 = shalt.err (!%p782_p9)
}
  0x2b   : > { %648 = dma.hbm_to_vmem [thread:$0]  (!%p1002_p10), %s201_s6, 128, %s203_s8, %s191_s10  }
  0x2c   : > { %211 = sbr.rel (%p963_p8) target bundleno = 1782 (0x6f6), region = 36  ;;  %s1019_s25 = sand.u32 (!%p963_p8), 1, %s871_s16  }
  0x2d   : > { %s605_s30 = sshll.u32 (!%p963_p8), %s1019_s25, 3  ;;  %s214_s5 = scalar_lea.sflag (!%p963_p8), [#allocation3], %s1019_s25 }
  0x2e   : > { %s217_s7 = scalar_lea.vmem (!%p963_p8), [#allocation2], %s605_s30 }
  0x31   : > { %846 = dma.done.wait (%p950_p4), %s214_s5, 128  }
  0x32   : > { %848 = vsyncadd (%p950_p4), %s214_s5, 4294967168 }
  0x33   : > { %850 = dma.done.wait (%p44_p1), [#allocation5], 16  }
  0x34   : > { %852 = vsyncadd (%p44_p1), [#allocation5], 4294967280 }
  0x35   : > { %854 = dma.done.wait (%p44_p1), [#allocation6], 16  }
  0x36   : > { %856 = vsyncadd (%p44_p1), [#allocation6], 4294967280 }
  0x37   : > { %858 = dma.done.wait (%p44_p1), [#allocation10], 256  }
  0x38   : > { %860 = vsyncadd (%p44_p1), [#allocation10], 4294967040 }
  0x39   : > { %238 = sfence }
  0x3a   : > { %v1041_v0 = vld [vmem:[%s217_s7] sm:$0xff]  ;;  %s886_s21 = smov 112   ;;  %s887_s26 = smov 96   ;;  %vm278_vm0 = vcmask 1047680   ;;  %v276_v18 = vlaneseq  ;;  %vm385_vm11 = vcmask 130048   ;;  %vm391_vm12 = vcmask 261120  }
  0x3b   : > { %v260_v1 = vrot.slane %v1041_v0, 4  ;;  %s888_s6 = smov 64   ;;  %s889_s8 = smov 16   ;;  %vm397_vm13 = vcmask 523264  }
  0x3c   : > { %s890_s9 = smov 127   ;;  %s891_s10 = smov 113   ;;  %v1054_v19 = vand.u32 127, %v276_v18 }
  0x3d   : > { %v261_v2 = vadd.f32 %v260_v1, %v1041_v0  ;;  %s294_s11 = sld [smem:[#allocation7]]  ;;  %s892_s29 = smov 114  }
  0x3e   : > { %v285_v20 = vadd.s32 4294967295, %v1054_v19  ;;  %s298_s12 = sld [smem:[#allocation8]]  ;;  %v310_v22 = vadd.s32 1, %v1054_v19  ;;  %v333_v47 = vand.u32 1, %v1054_v19  ;;  %s893_s5 = smov 126   ;;  %v350_v56 = vand.u32 2, %v1054_v19 }
  0x3f   : > { %v262_v3 = vrot.slane %v261_v2, 2  ;;  %s610_s14 = sld [smem:[#allocation7 + $0x1]]  ;;  %s894_s7 = smov 32   ;;  %vm402_vm14 = vcmp.lt.s32.totalorder %v1054_v19, 112  ;;  %vm401_vm15 = vcmp.ge.s32.totalorder %v1054_v19, 16 }
  0x40   : > { %vm286_vm1 = vcmp.ge.s32.totalorder %v285_v20, 0  ;;  %vm287_vm2 = vcmp.lt.s32.totalorder %v285_v20, 16  ;;  %s611_s20 = sld [smem:[#allocation8 + $0x1]]  ;;  %vm312_vm4 = vcmp.lt.s32.totalorder %v310_v22, 16  ;;  %vm334_vm5 = vcmp.eq.s32.totalorder %v333_v47, 0 }
  0x41   : > { %v263_v4 = vadd.f32 %v262_v3, %v261_v2  ;;  %s612_s27 = sld [smem:[#allocation7 + $0x2]]  ;;  %vm288_vm3 = vmand %vm286_vm1, %vm287_vm2  ;;  %vm351_vm6 = vcmp.eq.s32.totalorder %v350_v56, 0  ;;  %v400_v20 = vld [vmem:[#allocation9 + $0x8] sm:$0x1] }
  0x42   : > { %s613_s28 = sld [smem:[#allocation8 + $0x2]] }
  0x43   : > { %v264_v5 = vrot.slane %v263_v4, 1  ;;  %v295_v23 = vstv %s294_s11  ;;  %s477_s11 = scalar_lea.sflag [#allocation4], %s1019_s25 }
  0x44   : > { %v299_v24 = vstv %s298_s12 }
  0x45   : > { %v265_v6 = vadd.f32 %v264_v5, %v263_v4  ;;  %v303_v26 = vstv %s610_s14 }
  0x46   : > { %v307_v27 = vstv %s611_s20 }
  0x47   : > { %266 = vrot.lane.b32.xlu0 %v265_v6, %s886_s21  ;;  %v319_v30 = vstv %s612_s27 }
  0x48   : > { %v323_v31 = vstv %s613_s28 }
  0xb9   : > { %v267_v7 = vpop.permute.xlu0 %266 }
  0xba   : > { %v268_v8 = vadd.f32 %v267_v7, %v265_v6 }
  0xbc   : > { %269 = vrot.lane.b32.xlu0 %v268_v8, %s887_s26 }
 0x12e   : > { %v270_v9 = vpop.permute.xlu0 %269 }
 0x12f   : > { %v271_v10 = vadd.f32 %v270_v9, %v268_v8 }
 0x131   : > { %272 = vrot.lane.b32.xlu1 %v271_v10, %s888_s6 }
 0x1a3   : > { %v273_v11 = vpop.permute.xlu1 %272 }
 0x1a4   : > { %v274_v12 = vadd.f32 %v273_v11, %v271_v10 }
 0x1a6   : > { %v275_v13 = vmul.f32 0.015625, %v274_v12 }
 0x1a8   : > { %279 = vrot.lane.b32.xlu1 %v275_v13, %s889_s8  ;;  %v304_v32 = vmul.f32 %v303_v26, %v275_v13  ;;  %v308_v33 = vmul.f32 %v307_v27, %v275_v13 }
 0x21a   : > { %v280_v14 = vpop.permute.xlu1 %279 }
 0x21b   : > { %v281_v15 = vsel %vm278_vm0, %v280_v14, %v275_v13 }
 0x21c   : > { %282 = vrot.lane.b32.xlu2 %v281_v15, %s889_s8 }
 0x276   : > { %v283_v16 = vpop.permute.xlu2 %282 }
 0x277   : > { %v284_v17 = vsel %vm278_vm0, %v283_v16, %v275_v13  ;;  %v399_v16 = vld [vmem:[#allocation9] sm:$0xff] }
 0x278   : > { %314 = vrot.lane.b32.xlu0 %v284_v17, %s890_s9  ;;  %290 = vrot.lane.b32.xlu2 %v284_v17, %s891_s10  ;;  %v409_v17 = vrot.slane %v399_v16, 2  ;;  %v406_v22 = vrot.slane %v399_v16, 1  ;;  %v417_v26 = vrot.slane %v399_v16, 4 }
 0x2d2   : > { %v291_v21 = vpop.permute.xlu2 %290 }
 0x2d3   : > { %v293_v25 = vsel %vm288_vm3, %v291_v21, 0.0  ;;  %v420_v21 = vrot.slane %v399_v16, 5 }
 0x2d4   : > { %v296_v28 = vmul.f32 %v295_v23, %v293_v25  ;;  %v300_v29 = vmul.f32 %v299_v24, %v293_v25  ;;  %v413_v23 = vrot.slane %v399_v16, 3  ;;  %v424_v24 = vrot.slane %v399_v16, 6 }
 0x2d6   : > { %v305_v36 = vadd.f32 %v304_v32, %v296_v28  ;;  %v309_v37 = vadd.f32 %v308_v33, %v300_v29 }
 0x2ea   : > { %v315_v34 = vpop.permute.xlu0 %314 }
 0x2eb   : > { %v317_v35 = vsel %vm312_vm4, %v315_v34, 0.0 }
 0x2ec   : > { %v320_v38 = vmul.f32 %v319_v30, %v317_v35  ;;  %v324_v39 = vmul.f32 %v323_v31, %v317_v35  ;;  %v428_v31 = vrot.slane %v399_v16, 7 }
 0x2ee   : > { %v321_v40 = vadd.f32 %v320_v38, %v305_v36  ;;  %v325_v41 = vadd.f32 %v324_v39, %v309_v37 }
 0x2f0   : > { %v326_v42 = vmul.f32 %v325_v41, %v321_v40 }
 0x2f2   : > { %327 = vrot.lane.b32.xlu1 %v326_v42, %s889_s8 }
 0x364   : > { %v328_v43 = vpop.permute.xlu1 %327 }
 0x365   : > { %v329_v44 = vsel %vm278_vm0, %v328_v43, %v326_v42 }
 0x366   : > { %330 = vrot.lane.b32.xlu2 %v329_v44, %s889_s8 }
 0x3c0   : > { %v331_v45 = vpop.permute.xlu2 %330 }
 0x3c1   : > { %v332_v46 = vsel %vm278_vm0, %v331_v45, %v326_v42 }
 0x3c2   : > { %339 = vrot.lane.b32.xlu1 %v332_v46, %s891_s10  ;;  %336 = vrot.lane.b32.xlu0 %v332_v46, %s890_s9 }
 0x434   : > { %v340_v48 = vpop.permute.xlu1 %339  ;;  %v337_v49 = vpop.permute.xlu0 %336 }
 0x435   : > { %v342_v50 = vsel %vm334_vm5, %v337_v49, %v340_v48 }
 0x436   : > { %v343_v51 = vadd.f32 %v342_v50, %v326_v42 }
 0x438   : > { %344 = vrot.lane.b32.xlu2 %v343_v51, %s889_s8 }
 0x492   : > { %v345_v52 = vpop.permute.xlu2 %344 }
 0x493   : > { %v346_v53 = vsel %vm278_vm0, %v345_v52, %v343_v51 }
 0x494   : > { %347 = vrot.lane.b32.xlu0 %v346_v53, %s889_s8 }
 0x506   : > { %v348_v54 = vpop.permute.xlu0 %347 }
 0x507   : > { %v349_v55 = vsel %vm278_vm0, %v348_v54, %v343_v51 }
 0x508   : > { %356 = vrot.lane.b32.xlu2 %v349_v55, %s892_s29  ;;  %353 = vrot.lane.b32.xlu1 %v349_v55, %s893_s5  ;;  %v462_v55 = vshrl.u32 %v276_v18, 7 }
 0x50a   : > { %vm463_vm0 = vcmp.gt.s32.totalorder %v462_v55, 0  ;;  %vm468_vm1 = vcmp.lt.s32.totalorder %v462_v55, 7 }
 0x562   : > { %v357_v57 = vpop.permute.xlu2 %356 }
 0x57a   : > { %v354_v58 = vpop.permute.xlu1 %353 }
 0x57b   : > { %v359_v59 = vsel %vm351_vm6, %v354_v58, %v357_v57 }
 0x57c   : > { %v360_v60 = vadd.f32 %v359_v59, %v343_v51 }
 0x57e   : > { %v614_v61 = vmul.f32 -0.5, %v360_v60 }
 0x580   : > { %v363_v62 = vmul.f32 1.442695, %v614_v61 }
 0x582   : > { %707 = vpow2.f32 %v363_v62 }
 0x588   : > { %v708_v63 = vpop.eup %707 }
 0x589   : > { %v365_v1 = vadd.f32 1.0, %v708_v63 }
 0x58b   : > { %709 = vrcp.f32 %v365_v1  ;;  %v377_v5 = vand.u32 2147483648, %v365_v1  ;;  %v375_v7 = vand.u32 2147483647, %v365_v1  ;;  %vm371_vm8 = vweird.f32 %v365_v1 }
 0x58d   : > { %v378_v9 = vor.u32 1.1754944e-38, %v377_v5  ;;  %vm376_vm10 = vcmp.eq.f32.partialorder %v375_v7, 8.507059e+37 }
 0x591   : > { %v710_v2 = vpop.eup %709 }
 0x592   : > { %v367_v3 = vmul.f32 %v710_v2, %v365_v1  ;;  %vm372_vm7 = vweird.f32 %v710_v2 }
 0x593   : > { %vm373_vm9 = vmor %vm371_vm8, %vm372_vm7 }
 0x594   : > { %v368_v4 = vsub.f32 1.0, %v367_v3 }
 0x596   : > { %v369_v6 = vmul.f32 %v710_v2, %v368_v4 }
 0x598   : > { %v370_v8 = vadd.f32 %v710_v2, %v369_v6 }
 0x59a   : > { %v374_v10 = vsel %vm373_vm9, %v710_v2, %v370_v8 }
 0x59b   : > { %v379_v11 = vsel %vm376_vm10, %v378_v9, %v374_v10 }
 0x59c   : > { %382 = vrot.lane.b32.xlu0 %v379_v11, %s889_s8 }
 0x5a4   : > { %433 = vrot.lane.b32.xlu0 %v1041_v0, %s889_s8 }
 0x60e   : > { %v383_v12 = vpop.permute.xlu0 %382 }
 0x60f   : > { %v386_v13 = vsel %vm385_vm11, %v379_v11, %v383_v12 }
 0x610   : > { %388 = vrot.lane.b32.xlu1 %v386_v13, %s894_s7 }
 0x616   : > { %v434_v45 = vpop.permute.xlu0 %433 }
 0x618   : > { %435 = vrot.lane.b32.xlu1 %v1041_v0, %s886_s21  ;;  %s616_s21 = sshll.u32 %s941_s19, 3  ;;  %s258_s19 = scalar_lea.vmem [#allocation11], %s605_s30 }
 0x619   : > { %s487_s8 = scalar_lea.hbm %s1127_s4, %s616_s21  ;;  %s489_s9 = sshll.u32 %s258_s19, 4  ;;  %s490_s9 = int_to_ptr.vmem [resolvable:$true] %s489_s9 }
 0x61a   : > { %s491_s10 = sshll.u32 %s487_s8, 4  ;;  %s821_s30 = scalar_lea.hbm %s1127_s4, 16  ;;  %s492_s10 = int_to_ptr.hbm [resolvable:$true] %s491_s10 }
 0x61b   : > { %s815_s12 = sshra.s32 %s492_s10, 4  ;;  %s816_s12 = int_to_ptr.hbm [resolvable:$true] %s815_s12 }
 0x61c   : > { %s817_s14 = scalar_lea.hbm %s816_s12, 8  ;;  %p822_p9 = scmp.lt.s32.totalorder %s816_s12, %s1127_s4 }
 0x61d   : > { %p818_p1 = scmp.ne.s32.totalorder %s816_s12, %s817_s14  ;;  %p823_p10 = scmp.lt.s32.totalorder %s821_s30, %s817_s14 }
 0x61f   : > { %p819_p4 = pnand %p818_p1, %p992_p3  ;;  %p824_p2 = por %p823_p10, %p822_p9 }
 0x621   : > { %p820_p8 = pneg %p819_p4 }
 0x623   : > { %p825_p11 = pnand %p824_p2, %p820_p8 }
 0x682   : > { %v389_v14 = vpop.permute.xlu1 %388 }
 0x683   : > { %v392_v15 = vsel %vm391_vm12, %v386_v13, %v389_v14 }
 0x684   : > { %394 = vrot.lane.b32.xlu2 %v392_v15, %s888_s6 }
 0x68a   : > { %v436_v50 = vpop.permute.xlu1 %435 }
 0x6de   : > { %v395_v25 = vpop.permute.xlu2 %394 }
 0x6df   : > { %v398_v27 = vsel %vm397_vm13, %v392_v15, %v395_v25 }
 0x6e0   : > { %v411_v28 = vmul.f32 %v409_v17, %v398_v27  ;;  %v431_v29 = vmul.f32 %v400_v20, %v398_v27  ;;  %v403_v30 = vmul.f32 %v399_v16, %v398_v27  ;;  %v422_v32 = vmul.f32 %v420_v21, %v398_v27 }
 0x6e1   : > { %v408_v33 = vmul.f32 %v406_v22, %v398_v27  ;;  %v415_v34 = vmul.f32 %v413_v23, %v398_v27  ;;  %v426_v35 = vmul.f32 %v424_v24, %v398_v27  ;;  %v419_v39 = vmul.f32 %v417_v26, %v398_v27 }
 0x6e2   : > { %v412_v36 = vsel %vm402_vm14, %v411_v28, 0.0  ;;  %v432_v37 = vsel %vm402_vm14, %v431_v29, 0.0  ;;  %v404_v38 = vsel %vm401_vm15, %v403_v30, 0.0  ;;  %v430_v42 = vmul.f32 %v428_v31, %v398_v27 }
 0x6e3   : > { %v416_v40 = vsel %vm401_vm15, %v415_v34, 0.0  ;;  %v427_v41 = vsel %vm401_vm15, %v426_v35, 0.0  ;;  %v437_v43 = vperm.slane %v404_v38, 0  ;;  %v439_v44 = vperm.slane %v408_v33, 0 }
 0x6e4   : > { %v423_v46 = vsel %vm402_vm14, %v422_v32, 0.0  ;;  %v442_v47 = vperm.slane %v412_v36, 0  ;;  %v458_v48 = vperm.slane %v432_v37, 0  ;;  %v445_v49 = vperm.slane %v416_v40, 0 }
 0x6e5   : > { %v440_v51 = vmul.f32 %v439_v44, %v1041_v0  ;;  %v447_v52 = vperm.slane %v419_v39, 0  ;;  %v453_v53 = vperm.slane %v427_v41, 0  ;;  %v455_v54 = vperm.slane %v430_v42, 0 }
 0x6e6   : > { %v438_v56 = vmul.f32 %v437_v43, %v434_v45  ;;  %v446_v57 = vmul.f32 %v445_v49, %v434_v45  ;;  %v450_v58 = vperm.slane %v423_v46, 0  ;;  %v443_v61 = vmul.f32 %v442_v47, %v436_v50 }
 0x6e7   : > { %v448_v59 = vmul.f32 %v447_v52, %v1041_v0  ;;  %v456_v19 = vmul.f32 %v455_v54, %v1041_v0  ;;  %v454_v60 = vmul.f32 %v453_v53, %v434_v45  ;;  %v459_v63 = vmul.f32 %v458_v48, %v436_v50 }
 0x6e8   : > { %v441_v62 = vadd.f32 %v440_v51, %v438_v56  ;;  %v451_v4 = vmul.f32 %v450_v58, %v436_v50 }
 0x6e9   : > { %v449_v1 = vadd.f32 %v448_v59, %v446_v57  ;;  %v457_v2 = vadd.f32 %v456_v19, %v454_v60 }
 0x6ea   : > { %v444_v3 = vadd.f32 %v443_v61, %v441_v62 }
 0x6eb   : > { %v460_v5 = vadd.f32 %v459_v63, %v457_v2  ;;  %v452_v6 = vadd.f32 %v451_v4, %v449_v1 }
 0x6ec   : > { %v464_v18 = vrot.slane %v444_v3, 7 }
 0x6ed   : > { %v469_v0 = vrot.slane %v460_v5, 1 }
 0x6ee   : > { %v467_v7 = vsel %vm463_vm0, %v464_v18, 0.0 }
 0x6ef   : > { %v473_v8 = vadd.f32 %v467_v7, %v452_v6  ;;  %v472_v9 = vsel %vm468_vm1, %v469_v0, 0.0 }
 0x6f1   : > { %v474_v10 = vadd.f32 %v473_v8, %v472_v9 }
 0x6f3   : > { %475 = vst [vmem:[%s258_s19] sm:$0xff] %v474_v10 }
 0x6f4   : > { %828 = shalt.err (!%p825_p11)
}
 0x6f5   : > { %633 = dma.vmem_to_hbm [thread:$0]  (%p992_p3), %s490_s9, 128, %s492_s10, %s477_s11  }
 0x6f6 PF: > { %s503_s25 = sand.u32 1, %s867_s15   ;;  %p1133_p12 = scmp.ge.s32.totalorder %s879_s18, 2 }
 0x6f7   : > { %s504_s5 = scalar_lea.sflag [#allocation4], %s503_s25 }
 0x6f8   : > { %p650_p13 = pnand %p1133_p12, %p955_p6 }
 0x6fa   : > { %p651_p0 = pneg %p650_p13 }
 0x6fc   : > { %862 = dma.done.wait (%p651_p0), %s504_s5, 128  }
 0x6fd   : > { %864 = vsyncadd (%p651_p0), %s504_s5, 4294967168  ;;  %p20_p5 = scmp.ge.s32.totalorder %s979_s13, 4   ;;  %s1134_s15 = smov %s871_s16 }
 0x6fe   : > { %s1135_s16 = smov %s875_s17  ;;  %s1136_s17 = smov %s988_s23 }
 0x6ff   : > { %s1137_s18 = smov %s979_s13  ;;  %22 = sbr.rel (!%p20_p5) target bundleno = 8 (0x8), region = 95 }
 0x704   :  { %510 = vsyncpa [#allocation3], 1 }
 0x705   :  { %512 = vsyncpa [#allocation3 + $0x1], 1 }
 0x706   :  { %513 = vsyncpa [#allocation10], 1 }
 0x707   :  { %514 = vsyncpa [#allocation4], 1 }
 0x708   :  { %516 = vsyncpa [#allocation4 + $0x1], 1 }
 0x709   :  { %517 = vsyncpa [#allocation5], 1 }
 0x70a   :  { %519 = vsyncpa [#allocation5 + $0x1], 1 }
 0x70b   :  { %520 = vsyncpa [#allocation6], 1 }
 0x70c   :  { %522 = vsyncpa [#allocation6 + $0x1], 1 }

</bundles_post_ra>
